<compile_context>
chip_gen: v6e
topology: v6e:2x2x1
jax: 0.10.0
libtpu: 0.0.40
codegen_flags: <defaults>
</compile_context>

<pallas_src>
import functools

import jax
import jax.numpy as jnp
from jax.experimental import pallas as pl
from jax.experimental.pallas import tpu as pltpu

LANES = 128                      # vreg lane width
SUBLANES = 8                     # vreg sublane count
TM_MAX = 8192                    # rows per grid step -> 4 MiB f32 per input block
VMEM_LIMIT_BYTES = 48 * 1024 * 1024


def _round_up(x, m):
    return ((x + m - 1) // m) * m


def _inclusive_loss_kernel(scar_ref, gd_ref, out_ref, num_acc, den_acc,
                           *, tm, steps, rows):
    """Grid = (ncores, steps); each step consumes one (tm, LANES) tile.

    num_acc / den_acc are per-core VMEM (8,128) f32 accumulators (VPU adds
    only).  Final XLU reduce + SMEM store of the (num, den) partials happens
    on the last step of each core.
    """
    c = pl.program_id(0)
    i = pl.program_id(1)

    @pl.when(i == 0)
    def _():
        num_acc[...] = jnp.zeros_like(num_acc)
        den_acc[...] = jnp.zeros_like(den_acc)

    # Logical (unclamped) block index -> first row covered by this tile.
    blk = c * steps + i
    row0 = blk * tm

    s = scar_ref[...].astype(jnp.float32)
    g = gd_ref[...].astype(jnp.float32)

    def accumulate(one_minus_g, term):
        # Lane-wise partial sums: reduce only the leading axis of the
        # (tm//8, 8, 128) view -> pure elementwise vreg adds on the VPU.
        num_acc[...] += term.reshape(tm // SUBLANES, SUBLANES, LANES).sum(axis=0)
        den_acc[...] += one_minus_g.reshape(tm // SUBLANES, SUBLANES, LANES).sum(axis=0)

    is_full = (row0 + tm) <= rows

    @pl.when(is_full)
    def _():
        # Fast path (all but at most one block per core): no iota / compare /
        # select — just the arithmetic.
        one_minus_g = 1.0 - g
        accumulate(one_minus_g, -one_minus_g * jnp.log(1.0 - s + 1e-10))

    @pl.when(jnp.logical_not(is_full))
    def _():
        # Ragged last block (or clamped duplicate block on a 2-core split).
        # Keep jnp.where OUTSIDE the multiply so garbage (NaN/Inf) read from
        # the undefined tail of the tile can never leak into num/den.
        row_ids = row0 + jax.lax.broadcasted_iota(jnp.int32, (tm, LANES), 0)
        mask = row_ids < rows
        one_minus_g = jnp.where(mask, 1.0 - g, 0.0)
        term = jnp.where(mask, -(1.0 - g) * jnp.log(1.0 - s + 1e-10), 0.0)
        accumulate(one_minus_g, term)

    @pl.when(i == pl.num_programs(1) - 1)
    def _():
        out_ref[0, 0] = jnp.sum(num_acc[...])   # per-core numerator partial
        out_ref[0, 1] = jnp.sum(den_acc[...])   # per-core denominator partial


def inclusive_loss_scar(scar, gd_edema):
    """Pallas implementation of InclusiveLossScar.forward. Returns a scalar."""
    assert scar.shape == gd_edema.shape

    n = scar.size
    scar_f = scar.reshape(-1)          # free reshape, native dtype
    gd_f = gd_edema.reshape(-1)

    n_main = (n // LANES) * LANES      # largest multiple-of-128 prefix
    n_tail = n - n_main

    # Tiny (<128-element) remainder handled in plain JAX — no full-array pad.
    if n_tail:
        s_t = scar_f[n_main:].astype(jnp.float32)
        g_t = gd_f[n_main:].astype(jnp.float32)
        tail_num = jnp.sum(-(1.0 - g_t) * jnp.log(1.0 - s_t + 1e-10))
        tail_den = jnp.sum(1.0 - g_t)
    else:
        tail_num = jnp.zeros((), jnp.float32)
        tail_den = jnp.zeros((), jnp.float32)

    if n_main == 0:
        return tail_num / (tail_den + 1e-10)

    rows = n_main // LANES
    if n_tail:
        # TODO(synk): rare path (n % 128 != 0) still materializes a prefix
        # copy because the pallas_call operand must be a dense (rows, 128)
        # buffer; the common multiple-of-128 case below is copy-free.
        scar2d = scar_f[:n_main].reshape(rows, LANES)
        gd2d = gd_f[:n_main].reshape(rows, LANES)
    else:
        scar2d = scar_f.reshape(rows, LANES)
        gd2d = gd_f.reshape(rows, LANES)

    # Two TensorCores only on v7x-class chips; v5e/v6e are single-TC so the
    # leading axis collapses to 1 (no clamped duplicate block).
    kind = jax.devices()[0].device_kind.lower()
    ncores = 2 if ("v7" in kind or "7x" in kind) else 1

    tm = min(TM_MAX, _round_up(rows, SUBLANES))   # tm % 8 == 0 always
    total_blocks = pl.cdiv(rows, tm)
    steps = pl.cdiv(total_blocks, ncores)
    last_blk = total_blocks - 1

    def in_map(c, i):
        # Clamp so DMA origins stay in-bounds; the kernel's row mask zeroes
        # any re-read / ragged rows.
        return (jnp.minimum(c * steps + i, last_blk), 0)

    kernel = functools.partial(_inclusive_loss_kernel,
                               tm=tm, steps=steps, rows=rows)

    if ncores == 2:
        dim_sem = (pltpu.CORE_PARALLEL, pltpu.ARBITRARY)
    else:
        dim_sem = (pltpu.ARBITRARY, pltpu.ARBITRARY)

    in_bytes = (scar2d.size * scar2d.dtype.itemsize
                + gd2d.size * gd2d.dtype.itemsize)
    cost = pl.CostEstimate(
        flops=10 * n_main,
        transcendentals=n_main,
        bytes_accessed=in_bytes + ncores * 2 * 4,
    )

    # TODO(synk): if the surrounding model permits, feed scar/gd_edema as
    # bf16 (or gd_edema as int8 mask) — the kernel already upcasts in-register,
    # and halving streamed bytes is the only way past the f32 HBM roofline.
    partials = pl.pallas_call(
        kernel,
        out_shape=jax.ShapeDtypeStruct((ncores, 2), jnp.float32),
        grid_spec=pltpu.PrefetchScalarGridSpec(
            num_scalar_prefetch=0,
            grid=(ncores, steps),
            in_specs=[
                pl.BlockSpec((tm, LANES), in_map),
                pl.BlockSpec((tm, LANES), in_map),
            ],
            out_specs=pl.BlockSpec((1, 2), lambda c, i: (c, 0),
                                   memory_space=pltpu.MemorySpace.SMEM),
            scratch_shapes=[
                pltpu.VMEM((SUBLANES, LANES), jnp.float32),   # numerator acc
                pltpu.VMEM((SUBLANES, LANES), jnp.float32),   # denominator acc
            ],
        ),
        compiler_params=pltpu.CompilerParams(
            dimension_semantics=dim_sem,
            vmem_limit_bytes=VMEM_LIMIT_BYTES),
        cost_estimate=cost,
    )(scar2d, gd2d)

    num = jnp.sum(partials[:, 0]) + tail_num
    den = jnp.sum(partials[:, 1]) + tail_den
    return num / (den + 1e-10)


def _reference(scar, gd_edema):
    scar = scar.astype(jnp.float32)
    gd_edema = gd_edema.astype(jnp.float32)
    num = jnp.sum(-(1.0 - gd_edema) * jnp.log(1.0 - scar + 1e-10))
    den = jnp.sum(1.0 - gd_edema) + 1e-10
    return num / den


if __name__ == "__main__":
    key = jax.random.PRNGKey(0)
    k1, k2 = jax.random.split(key)

    # Small NCHW-ish shapes: probabilities in (0,1) for scar, binary gd_edema.
    shape = (2, 4, 16, 16)
    scar = jax.random.uniform(k1, shape, dtype=jnp.float32,
                              minval=0.0, maxval=0.999)
    gd_edema = (jax.random.uniform(k2, shape, dtype=jnp.float32) > 0.5
                ).astype(jnp.float32)

    loss = inclusive_loss_scar(scar, gd_edema)
    loss = jax.block_until_ready(loss)

    ref = _reference(scar, gd_edema)
    assert jnp.allclose(loss, ref, rtol=1e-5, atol=1e-5), (loss, ref)

    print("KERNEL_OK")
</pallas_src>

<mosaic_0001>
module attributes {stable_mosaic.version = 11 : i64} {
  func.func @_inclusive_loss_kernel(%arg0: i32, %arg1: i32, %arg2: memref<16x128xf32, #tpu.memory_space<vmem>>, %arg3: memref<16x128xf32, #tpu.memory_space<vmem>>, %arg4: memref<1x2xf32, #tpu.memory_space<smem>>, %arg5: memref<8x128xf32, #tpu.memory_space<vmem>>, %arg6: memref<8x128xf32, #tpu.memory_space<vmem>>) attributes {dimension_semantics = [#tpu.dimension_semantics<arbitrary>, #tpu.dimension_semantics<arbitrary>], iteration_bounds = array<i64: 1, 1>, scalar_prefetch = 0 : i64, scratch_operands = 2 : i64, tpu.core_type = #tpu.core_type<tc>, window_params = [{transform_indices = @transform_0, window_bounds = array<i64: 16, 128>}, {transform_indices = @transform_1, window_bounds = array<i64: 16, 128>}, {transform_indices = @transform_2, window_bounds = array<i64: 1, 2>}]} {
    %c0_i32 = arith.constant 0 : i32
    %0 = arith.cmpi eq, %arg1, %c0_i32 : i32
    %1 = arith.extui %0 : i1 to i32
    %c0_i32_0 = arith.constant 0 : i32
    %2 = arith.cmpi ne, %1, %c0_i32_0 : i32
    scf.if %2 {
      %cst = arith.constant 0.000000e+00 : f32
      %18 = vector.broadcast %cst : f32 to vector<8x128xf32>
      %c0_10 = arith.constant 0 : index
      %c0_11 = arith.constant 0 : index
      %19 = vector.load %arg5[%c0_10, %c0_11] : memref<8x128xf32, #tpu.memory_space<vmem>>, vector<8x128xf32>
      tpu.vector_store %arg5[%c0_10, %c0_11], %18 {strides = array<i32>} : memref<8x128xf32, #tpu.memory_space<vmem>>, vector<8x128xf32>,
      %cst_12 = arith.constant 0.000000e+00 : f32
      %20 = vector.broadcast %cst_12 : f32 to vector<8x128xf32>
      %c0_13 = arith.constant 0 : index
      %c0_14 = arith.constant 0 : index
      %21 = vector.load %arg6[%c0_13, %c0_14] : memref<8x128xf32, #tpu.memory_space<vmem>>, vector<8x128xf32>
      tpu.vector_store %arg6[%c0_13, %c0_14], %20 {strides = array<i32>} : memref<8x128xf32, #tpu.memory_space<vmem>>, vector<8x128xf32>,
    } else {
    }
    %c1_i32 = arith.constant 1 : i32
    %3 = arith.muli %arg0, %c1_i32 : i32
    %4 = arith.addi %3, %arg1 : i32
    %c16_i32 = arith.constant 16 : i32
    %5 = arith.muli %4, %c16_i32 : i32
    %c0 = arith.constant 0 : index
    %c0_1 = arith.constant 0 : index
    %6 = vector.load %arg2[%c0, %c0_1] : memref<16x128xf32, #tpu.memory_space<vmem>>, vector<16x128xf32>
    %c0_2 = arith.constant 0 : index
    %c0_3 = arith.constant 0 : index
    %7 = vector.load %arg3[%c0_2, %c0_3] : memref<16x128xf32, #tpu.memory_space<vmem>>, vector<16x128xf32>
    %c16_i32_4 = arith.constant 16 : i32
    %8 = arith.addi %5, %c16_i32_4 : i32
    %c16_i32_5 = arith.constant 16 : i32
    %9 = arith.cmpi sle, %8, %c16_i32_5 : i32
    %10 = arith.extui %9 : i1 to i32
    %c0_i32_6 = arith.constant 0 : i32
    %11 = arith.cmpi ne, %10, %c0_i32_6 : i32
    scf.if %11 {
      %cst = arith.constant 1.000000e+00 : f32
      %18 = vector.broadcast %cst : f32 to vector<16x128xf32>
      %19 = arith.subf %18, %7 : vector<16x128xf32>
      %cst_10 = arith.constant 0.000000e+00 : f32
      %20 = vector.broadcast %cst_10 : f32 to vector<16x128xf32>
      %21 = arith.subf %20, %19 : vector<16x128xf32>
      %cst_11 = arith.constant 1.000000e+00 : f32
      %22 = vector.broadcast %cst_11 : f32 to vector<16x128xf32>
      %23 = arith.subf %22, %6 : vector<16x128xf32>
      %cst_12 = arith.constant 1.000000e-10 : f32
      %24 = vector.broadcast %cst_12 : f32 to vector<16x128xf32>
      %25 = arith.addf %23, %24 : vector<16x128xf32>
      %26 = math.log %25 : vector<16x128xf32>
      %27 = arith.mulf %21, %26 : vector<16x128xf32>
      %c0_13 = arith.constant 0 : index
      %c0_14 = arith.constant 0 : index
      %28 = vector.load %arg5[%c0_13, %c0_14] : memref<8x128xf32, #tpu.memory_space<vmem>>, vector<8x128xf32>
      %29 = vector.shape_cast %27 : vector<16x128xf32> to vector<2x8x128xf32>
      %cst_15 = arith.constant dense<0.000000e+00> : vector<8x128xf32>
      %30 = vector.multi_reduction <add>, %29, %cst_15 [0] : vector<2x8x128xf32> to vector<8x128xf32>
      %31 = arith.addf %28, %30 : vector<8x128xf32>
      %c0_16 = arith.constant 0 : index
      %c0_17 = arith.constant 0 : index
      %32 = vector.load %arg5[%c0_16, %c0_17] : memref<8x128xf32, #tpu.memory_space<vmem>>, vector<8x128xf32>
      tpu.vector_store %arg5[%c0_16, %c0_17], %31 {strides = array<i32>} : memref<8x128xf32, #tpu.memory_space<vmem>>, vector<8x128xf32>,
      %c0_18 = arith.constant 0 : index
      %c0_19 = arith.constant 0 : index
      %33 = vector.load %arg6[%c0_18, %c0_19] : memref<8x128xf32, #tpu.memory_space<vmem>>, vector<8x128xf32>
      %34 = vector.shape_cast %19 : vector<16x128xf32> to vector<2x8x128xf32>
      %cst_20 = arith.constant dense<0.000000e+00> : vector<8x128xf32>
      %35 = vector.multi_reduction <add>, %34, %cst_20 [0] : vector<2x8x128xf32> to vector<8x128xf32>
      %36 = arith.addf %33, %35 : vector<8x128xf32>
      %c0_21 = arith.constant 0 : index
      %c0_22 = arith.constant 0 : index
      %37 = vector.load %arg6[%c0_21, %c0_22] : memref<8x128xf32, #tpu.memory_space<vmem>>, vector<8x128xf32>
      tpu.vector_store %arg6[%c0_21, %c0_22], %36 {strides = array<i32>} : memref<8x128xf32, #tpu.memory_space<vmem>>, vector<8x128xf32>,
    } else {
    }
    %true = arith.constant true
    %12 = arith.xori %9, %true : i1
    %13 = arith.extui %12 : i1 to i32
    %c0_i32_7 = arith.constant 0 : i32
    %14 = arith.cmpi ne, %13, %c0_i32_7 : i32
    scf.if %14 {
      %18 = tpu.iota {dimensions = array<i32: 0>} : vector<16x128xi32>
      %19 = vector.broadcast %5 : i32 to vector<16x128xi32>
      %20 = arith.addi %19, %18 : vector<16x128xi32>
      %c16_i32_10 = arith.constant 16 : i32
      %21 = vector.broadcast %c16_i32_10 : i32 to vector<16x128xi32>
      %22 = arith.cmpi slt, %20, %21 : vector<16x128xi32>
      %cst = arith.constant 1.000000e+00 : f32
      %23 = vector.broadcast %cst : f32 to vector<16x128xf32>
      %24 = arith.subf %23, %7 : vector<16x128xf32>
      %cst_11 = arith.constant 0.000000e+00 : f32
      %25 = vector.broadcast %cst_11 : f32 to vector<16x128xf32>
      %26 = arith.select %22, %24, %25 : vector<16x128xi1>, vector<16x128xf32>
      %cst_12 = arith.constant 1.000000e+00 : f32
      %27 = vector.broadcast %cst_12 : f32 to vector<16x128xf32>
      %28 = arith.subf %27, %7 : vector<16x128xf32>
      %cst_13 = arith.constant 0.000000e+00 : f32
      %29 = vector.broadcast %cst_13 : f32 to vector<16x128xf32>
      %30 = arith.subf %29, %28 : vector<16x128xf32>
      %cst_14 = arith.constant 1.000000e+00 : f32
      %31 = vector.broadcast %cst_14 : f32 to vector<16x128xf32>
      %32 = arith.subf %31, %6 : vector<16x128xf32>
      %cst_15 = arith.constant 1.000000e-10 : f32
      %33 = vector.broadcast %cst_15 : f32 to vector<16x128xf32>
      %34 = arith.addf %32, %33 : vector<16x128xf32>
      %35 = math.log %34 : vector<16x128xf32>
      %36 = arith.mulf %30, %35 : vector<16x128xf32>
      %cst_16 = arith.constant 0.000000e+00 : f32
      %37 = vector.broadcast %cst_16 : f32 to vector<16x128xf32>
      %38 = arith.select %22, %36, %37 : vector<16x128xi1>, vector<16x128xf32>
      %c0_17 = arith.constant 0 : index
      %c0_18 = arith.constant 0 : index
      %39 = vector.load %arg5[%c0_17, %c0_18] : memref<8x128xf32, #tpu.memory_space<vmem>>, vector<8x128xf32>
      %40 = vector.shape_cast %38 : vector<16x128xf32> to vector<2x8x128xf32>
      %cst_19 = arith.constant dense<0.000000e+00> : vector<8x128xf32>
      %41 = vector.multi_reduction <add>, %40, %cst_19 [0] : vector<2x8x128xf32> to vector<8x128xf32>
      %42 = arith.addf %39, %41 : vector<8x128xf32>
      %c0_20 = arith.constant 0 : index
      %c0_21 = arith.constant 0 : index
      %43 = vector.load %arg5[%c0_20, %c0_21] : memref<8x128xf32, #tpu.memory_space<vmem>>, vector<8x128xf32>
      tpu.vector_store %arg5[%c0_20, %c0_21], %42 {strides = array<i32>} : memref<8x128xf32, #tpu.memory_space<vmem>>, vector<8x128xf32>,
      %c0_22 = arith.constant 0 : index
      %c0_23 = arith.constant 0 : index
      %44 = vector.load %arg6[%c0_22, %c0_23] : memref<8x128xf32, #tpu.memory_space<vmem>>, vector<8x128xf32>
      %45 = vector.shape_cast %26 : vector<16x128xf32> to vector<2x8x128xf32>
      %cst_24 = arith.constant dense<0.000000e+00> : vector<8x128xf32>
      %46 = vector.multi_reduction <add>, %45, %cst_24 [0] : vector<2x8x128xf32> to vector<8x128xf32>
      %47 = arith.addf %44, %46 : vector<8x128xf32>
      %c0_25 = arith.constant 0 : index
      %c0_26 = arith.constant 0 : index
      %48 = vector.load %arg6[%c0_25, %c0_26] : memref<8x128xf32, #tpu.memory_space<vmem>>, vector<8x128xf32>
      tpu.vector_store %arg6[%c0_25, %c0_26], %47 {strides = array<i32>} : memref<8x128xf32, #tpu.memory_space<vmem>>, vector<8x128xf32>,
    } else {
    }
    %c0_i32_8 = arith.constant 0 : i32
    %15 = arith.cmpi eq, %arg1, %c0_i32_8 : i32
    %16 = arith.extui %15 : i1 to i32
    %c0_i32_9 = arith.constant 0 : i32
    %17 = arith.cmpi ne, %16, %c0_i32_9 : i32
    scf.if %17 {
      %c0_10 = arith.constant 0 : index
      %c0_11 = arith.constant 0 : index
      %18 = vector.load %arg5[%c0_10, %c0_11] : memref<8x128xf32, #tpu.memory_space<vmem>>, vector<8x128xf32>
      %19 = vector.shape_cast %18 : vector<8x128xf32> to vector<1x8x128xf32>
      %cst = arith.constant dense<0.000000e+00> : vector<1xf32>
      %20 = vector.multi_reduction <add>, %19, %cst [1, 2] : vector<1x8x128xf32> to vector<1xf32>
      %21 = vector.shape_cast %20 : vector<1xf32> to vector<1x1x1xf32>
      %22 = vector.extract %21[0, 0, 0] : f32 from vector<1x1x1xf32>
      %c0_12 = arith.constant 0 : index
      %c0_13 = arith.constant 0 : index
      %23 = memref.load %arg4[%c0_12, %c0_13] : memref<1x2xf32, #tpu.memory_space<smem>>
      memref.store %22, %arg4[%c0_12, %c0_13] : memref<1x2xf32, #tpu.memory_space<smem>>
      %c0_14 = arith.constant 0 : index
      %c0_15 = arith.constant 0 : index
      %24 = vector.load %arg6[%c0_14, %c0_15] : memref<8x128xf32, #tpu.memory_space<vmem>>, vector<8x128xf32>
      %25 = vector.shape_cast %24 : vector<8x128xf32> to vector<1x8x128xf32>
      %cst_16 = arith.constant dense<0.000000e+00> : vector<1xf32>
      %26 = vector.multi_reduction <add>, %25, %cst_16 [1, 2] : vector<1x8x128xf32> to vector<1xf32>
      %27 = vector.shape_cast %26 : vector<1xf32> to vector<1x1x1xf32>
      %28 = vector.extract %27[0, 0, 0] : f32 from vector<1x1x1xf32>
      %c0_17 = arith.constant 0 : index
      %c1 = arith.constant 1 : index
      %29 = memref.load %arg4[%c0_17, %c1] : memref<1x2xf32, #tpu.memory_space<smem>>
      memref.store %28, %arg4[%c0_17, %c1] : memref<1x2xf32, #tpu.memory_space<smem>>
    } else {
    }
    return
  }
  func.func @transform_0(%arg0: i32, %arg1: i32) -> (i32, i32) {
    %c1_i32 = arith.constant 1 : i32
    %0 = arith.muli %arg0, %c1_i32 : i32
    %1 = arith.addi %0, %arg1 : i32
    %c0_i32 = arith.constant 0 : i32
    %2 = arith.minsi %1, %c0_i32 : i32
    %c0_i32_0 = arith.constant 0 : i32
    %c0_i32_1 = arith.constant 0 : i32
    return %2, %c0_i32_0 : i32, i32
  }
  func.func @transform_1(%arg0: i32, %arg1: i32) -> (i32, i32) {
    %c1_i32 = arith.constant 1 : i32
    %0 = arith.muli %arg0, %c1_i32 : i32
    %1 = arith.addi %0, %arg1 : i32
    %c0_i32 = arith.constant 0 : i32
    %2 = arith.minsi %1, %c0_i32 : i32
    %c0_i32_0 = arith.constant 0 : i32
    %c0_i32_1 = arith.constant 0 : i32
    return %2, %c0_i32_0 : i32, i32
  }
  func.func @transform_2(%arg0: i32, %arg1: i32) -> (i32, i32) {
    %c0_i32 = arith.constant 0 : i32
    %c0_i32_0 = arith.constant 0 : i32
    return %arg0, %c0_i32 : i32, i32
  }
}

</mosaic_0001>

<bundles_post_ra>
// kernel: tpu_custom_call.1
= control target key start
LH: loop header
LB: loop body
LE: loop exit
PB: predicated region body
PF: predicated region fallthrough
CT: control target
= control target key end

     0   :  { %7 = vsyncpa [#allocation5], 0  ;;  %s279_s0 = inlined_call_operand.hbm [shape: f32[16,128], index: 0, kind: input, shape index: {}]   ;;  %s280_s1 = inlined_call_operand.hbm [shape: f32[16,128], index: 1, kind: input, shape index: {}]   ;;  %s281_s2 = inlined_call_operand.hbm [shape: f32[1,2], index: 2, kind: output, shape index: {}]  }
   0x1   :  { %8 = vsyncpa [#allocation8], 0 }
   0x2   :  { %9 = vsyncpa [#allocation6], 0  ;;  %s250_s9 = smov [#allocation4]  }
   0x3   :  { %s21_s10 = sshll.u32 %s250_s9, 4  ;;  %s22_s10 = int_to_ptr.vmem [resolvable:$true] %s21_s10 }
   0x4   :  { %s204_s11 = scalar_lea.vmem %s22_s10, 256  ;;  %p209_p1 = scmp.lt.s32.totalorder %s22_s10, %s22_s10 }
   0x5   :  { %p205_p0 = scmp.ne.s32.totalorder %s22_s10, %s204_s11  ;;  %p210_p2 = scmp.lt.s32.totalorder %s204_s11, %s204_s11 }
   0x7   :  { %p211_p3 = por %p210_p2, %p209_p1 }
   0x9   :  { %p212_p4 = pnand %p211_p3, %p205_p0 }
   0xb   :  { %215 = shalt.err (!%p212_p4)
}
   0xc   :  { %s251_s12 = smov 128   ;;  %s252_s13 = smov 8  }
   0xd   :  { %27 = dma.hbm_to_vmem [thread:$0]  %s279_s0, 256, %s22_s10, [#allocation5], %s251_s12, %s251_s12, %s252_s13  }
   0xe   :  { %s253_s16 = smov [#allocation7]  }
   0xf   :  { %s39_s17 = sshll.u32 %s253_s16, 4  ;;  %s40_s17 = int_to_ptr.vmem [resolvable:$true] %s39_s17 }
  0x10   :  { %s224_s18 = scalar_lea.vmem %s40_s17, 256  ;;  %p229_p6 = scmp.lt.s32.totalorder %s40_s17, %s40_s17 }
  0x11   :  { %p225_p5 = scmp.ne.s32.totalorder %s40_s17, %s224_s18  ;;  %p230_p7 = scmp.lt.s32.totalorder %s224_s18, %s224_s18 }
  0x13   :  { %p231_p8 = por %p230_p7, %p229_p6 }
  0x15   :  { %p232_p9 = pnand %p231_p8, %p225_p5 }
  0x17   :  { %235 = shalt.err (!%p232_p9)
}
  0x18   :  { %45 = dma.hbm_to_vmem [thread:$0]  %s280_s1, 256, %s40_s17, [#allocation8], %s251_s12, %s251_s12, %s252_s13  }
  0x19   :  { %244 = dma.done.wait [#allocation5], 256  }
  0x1a   :  { %245 = vsyncadd [#allocation5], 4294967040 }
  0x1b   :  { %246 = dma.done.wait [#allocation8], 256  }
  0x1c   :  { %247 = vsyncadd [#allocation8], 4294967040  ;;  %v68_v0 = vld [vmem:[#allocation4] sm:$0xff]  ;;  %v69_v1 = vld [vmem:[#allocation4 + $0x8] sm:$0xff]  ;;  %s254_s21 = smov [#allocation9]  }
  0x1d   :  { %v81_v2 = vsub.f32 1.0, %v68_v0  ;;  %v82_v3 = vsub.f32 1.0, %v69_v1  ;;  %v70_v6 = vld [vmem:[#allocation7] sm:$0xff]  ;;  %v71_v7 = vld [vmem:[#allocation7 + $0x8] sm:$0xff] }
  0x1e   :  { %v77_v8 = vsub.f32 1.0, %v70_v6  ;;  %v78_v9 = vsub.f32 1.0, %v71_v7 }
  0x1f   :  { %v83_v4 = vadd.f32 1e-10, %v81_v2  ;;  %v84_v5 = vadd.f32 1e-10, %v82_v3 }
  0x20   :  { %v79_v10 = vsub.f32 0.0, %v77_v8  ;;  %v80_v12 = vsub.f32 0.0, %v78_v9  ;;  %v96_v19 = vadd.f32 %v78_v9, %v77_v8 }
  0x21   :  { %192 = vlog2.f32 %v83_v4 }
  0x22   :  { %194 = vlog2.f32 %v84_v5 }
  0x2e   :  { %v193_v11 = vpop.eup %192 }
  0x2f   :  { %v195_v13 = vpop.eup %194  ;;  %v86_v14 = vmul.f32 0.6931472, %v193_v11 }
  0x30   :  { %v88_v15 = vmul.f32 0.6931472, %v195_v13 }
  0x31   :  { %v89_v16 = vmul.f32 %v86_v14, %v79_v10 }
  0x32   :  { %v90_v17 = vmul.f32 %v88_v15, %v80_v12 }
  0x34   :  { %v92_v18 = vadd.f32 %v90_v17, %v89_v16 }
  0x36   :  { %141 = vadd.xlane.f32.xlu0 %v92_v18 }
  0x3a   :  { %153 = vadd.xlane.f32.xlu0 %v96_v19 }
  0xbf   :  { %v142_v20 = vpop.xlane.xlu0 %141 }
  0xc0   :  { %v143_v21 = vrot.slane %v142_v20, 4 }
  0xc2   :  { %v144_v22 = vadd.f32 %v143_v21, %v142_v20 }
  0xc3   :  { %v154_v23 = vpop.xlane.xlu0 %153 }
  0xc4   :  { %v145_v24 = vrot.slane %v144_v22, 2  ;;  %v155_v25 = vrot.slane %v154_v23, 4 }
  0xc6   :  { %v156_v26 = vadd.f32 %v155_v25, %v154_v23  ;;  %v146_v27 = vadd.f32 %v145_v24, %v144_v22 }
  0xc8   :  { %v157_v28 = vrot.slane %v156_v26, 2  ;;  %v147_v29 = vrot.slane %v146_v27, 1 }
  0xca   :  { %v158_v30 = vadd.f32 %v157_v28, %v156_v26  ;;  %v148_v31 = vadd.f32 %v147_v29, %v146_v27 }
  0xcc   :  { %183 = vpush %v148_v31  ;;  %v159_v32 = vrot.slane %v158_v30, 1 }
  0xce   :  { %v160_v33 = vadd.f32 %v159_v32, %v158_v30 }
  0xd0   :  { %185 = vpush %v160_v33 }
  0xfd   :  { %s184_s0 = spop %183 }
  0xfe   :  { %151 = sst [smem:[#allocation9]] %s184_s0 }
 0x101   :  { %s186_s1 = spop %185 }
 0x102   :  { %163 = sst [smem:[#allocation9 + $0x1]] %s186_s1 }
 0x103   :  { %171 = dma.smem_to_hbm %s254_s21, 16, %s281_s2, [#allocation6]  }
 0x104   :  { %248 = dma.done.wait [#allocation6], 16  }
 0x105   :  { %249 = vsyncadd [#allocation6], 4294967280 }
 0x106   :  { %175 = sfence }
 0x107   :  { %176 = vsyncpa [#allocation5], 1 }
 0x108   :  { %177 = vsyncpa [#allocation8], 1 }
 0x109   :  { %178 = vsyncpa [#allocation6], 1 }

</bundles_post_ra>
